<compile_context>
chip_gen: v6e
topology: v6e:2x2x1
jax: 0.10.0
libtpu: 0.0.40
codegen_flags: <defaults>
</compile_context>

<pallas_src>
import functools

import jax
import jax.numpy as jnp
import numpy as np
from jax.experimental import pallas as pl
from jax.experimental.pallas import tpu as pltpu


# ----------------------------------------------------------------------------
# Host-side helpers
# ----------------------------------------------------------------------------
def _build_pool_masks(H, W, images_per_tile):
    """Additive 0/-inf masks (8, L) for the 8 roll taps of a separable 5x5 pool.

    Lane index layout inside one tile: lane = img*H*W + h*W + w.
    A tap is valid iff source and destination are in the same image and the
    source lies inside the 5x5 window (per-axis radius check). This also
    rejects any wrap across image/tile boundaries.
    """
    HW = H * W
    L = images_per_tile * HW
    idx = np.arange(L, dtype=np.int64)
    img = idx // HW
    row = (idx % HW) // W
    col = idx % W

    # (shift, radius_h, radius_w); first 4 taps along W, last 4 along H.
    taps = [(-2, 0, 2), (-1, 0, 2), (1, 0, 2), (2, 0, 2),
            (-2 * W, 2, 0), (-W, 2, 0), (W, 2, 0), (2 * W, 2, 0)]

    masks = []
    for s, rh, rw in taps:
        src = (idx + s) % L
        ok = ((src // HW == img)
              & (np.abs((src % HW) // W - row) <= rh)
              & (np.abs(src % W - col) <= rw))
        masks.append(ok)
    add_mask = np.where(np.stack(masks, 0), 0.0, -np.inf).astype(np.float32)

    # (roll_amount, mask_row) per tap; rolled[i] = a[(i + s) % L] for roll = -s mod L.
    w_taps = tuple(((-taps[i][0]) % L, i) for i in range(4))
    h_taps = tuple(((-taps[i][0]) % L, i) for i in range(4, 8))
    return add_mask, w_taps, h_taps


def _pick_images_per_tile(N, HW, c1, c_, c2, *, target_lanes=512,
                          vmem_budget_bytes=6 << 20, min_grid_steps=2):
    """Largest divisor of N giving a lane tile >= target_lanes, within a VMEM
    budget, while keeping >= 2 grid steps when possible (v7x: 2 TensorCores)."""
    # Rough f32 bytes per image: double-buffered in/out blocks, masks,
    # concat scratch and ~6 c_-wide live intermediates.
    bytes_per_image = 4 * HW * (2 * c1 + 2 * c2 + 2 * 8 + 4 * c_ + 6 * c_)
    best = 1
    for d in range(1, N + 1):
        if N % d:
            continue
        if d * bytes_per_image > vmem_budget_bytes:
            break
        if N >= min_grid_steps and N // d < min_grid_steps:
            break
        best = d
        if d * HW >= target_lanes:
            break
    return best


# ----------------------------------------------------------------------------
# Fused SPP kernel. One grid step processes images_per_tile images, all data in
# VMEM with channel-major layout (channels, L) -> L = images_per_tile*H*W lanes.
#   x_ref    : (c1, L)      input feature maps
#   w1_ref   : (c_, c1)     cv1 1x1 weights (BN scale folded in)
#   b1_ref   : (c_, 1)      cv1 folded-BN bias
#   w2_ref   : (c2, 4*c_)   cv2 1x1 weights (BN scale folded in)
#   b2_ref   : (c2, 1)      cv2 folded-BN bias
#   mask_ref : (8, L)       additive 0/-inf pooling boundary masks (grid-invariant)
#   o_ref    : (c2, L)      output feature maps
#   cat_ref  : (4*c_, L)    VMEM scratch holding the channel concat
# ----------------------------------------------------------------------------
def _spp_kernel(x_ref, w1_ref, b1_ref, w2_ref, b2_ref, mask_ref,
                o_ref, cat_ref, *, w_taps, h_taps):
    # ---- cv1: 1x1 conv (BN scale pre-folded) + bias + SiLU -----------------
    z = jnp.dot(w1_ref[...], x_ref[...], preferred_element_type=jnp.float32)
    z = z + b1_ref[...]
    y = z * jax.nn.sigmoid(z)                       # SiLU on EUP

    c_, L = y.shape

    # Grid-invariant additive masks: load + broadcast once, reuse in all pools.
    def load_taps(taps):
        return [(rot, jnp.broadcast_to(mask_ref[row:row + 1, :], (c_, L)))
                for rot, row in taps]

    wm = load_taps(w_taps)
    hm = load_taps(h_taps)

    # ---- separable 5x5 max pool, stride 1, pad 2 (-inf padding) ------------
    def pool5(a):
        m = a
        for rot, msk in wm:                         # pass along W
            m = jnp.maximum(m, pltpu.roll(a, rot, axis=1) + msk)
        out = m
        for rot, msk in hm:                         # pass along H
            out = jnp.maximum(out, pltpu.roll(m, rot, axis=1) + msk)
        return out

    m5 = pool5(y)        # MaxPool2d(5, 1, 2)
    m9 = pool5(m5)       # == MaxPool2d(9, 1, 4)
    m13 = pool5(m9)      # == MaxPool2d(13, 1, 6)

    # ---- cv2: single matmul over the channel concat + bias + SiLU ----------
    cat_ref[0 * c_:1 * c_, :] = y
    cat_ref[1 * c_:2 * c_, :] = m5
    cat_ref[2 * c_:3 * c_, :] = m9
    cat_ref[3 * c_:4 * c_, :] = m13

    acc = jnp.dot(w2_ref[...], cat_ref[...], preferred_element_type=jnp.float32)
    acc = acc + b2_ref[...]
    o_ref[...] = (acc * jax.nn.sigmoid(acc)).astype(o_ref.dtype)


def spp_forward(x_nchw, params):
    """SPP forward. x_nchw: (N, c1, H, W) float. Returns (N, c2, H, W)."""
    N, c1, H, W = x_nchw.shape
    HW = H * W
    w1, s1, b1 = params["cv1"]          # (c_, c1), (c_,1), (c_,1)
    w2, s2, b2 = params["cv2"]          # (c2, 4*c_), (c2,1), (c2,1)
    c_ = w1.shape[0]
    c2 = w2.shape[0]
    assert w2.shape[1] == 4 * c_, "kernel implements the default SPP k=(5, 9, 13)"
    assert H > 4 and W > 4, "pooling roll/mask scheme requires H > 4 and W > 4"
    assert HW % 128 == 0, "HW must be a multiple of 128 (lane-dense output)"

    # Fold eval-mode BN scale into the 1x1 conv weights (exact transform).
    w1f = (w1 * s1).astype(jnp.float32)             # (c_, c1)
    w2f = (w2 * s2).astype(jnp.float32)             # (c2, 4*c_)
    b1f = b1.astype(jnp.float32)                    # (c_, 1)
    b2f = b2.astype(jnp.float32)                    # (c2, 1)

    ipt = _pick_images_per_tile(N, HW, c1, c_, c2)
    L = ipt * HW
    num_tiles = N // ipt
    add_mask, w_taps, h_taps = _build_pool_masks(H, W, ipt)

    # Channel-major, lane-dense layout: lanes carry [image, h, w].
    x_cm = jnp.transpose(x_nchw, (1, 0, 2, 3)).reshape(c1, N * HW).astype(jnp.float32)

    kern = functools.partial(_spp_kernel, w_taps=w_taps, h_taps=h_taps)

    out_cm = pl.pallas_call(
        kern,
        out_shape=jax.ShapeDtypeStruct((c2, N * HW), jnp.float32),
        grid_spec=pltpu.PrefetchScalarGridSpec(
            num_scalar_prefetch=0,
            grid=(num_tiles,),
            in_specs=[
                pl.BlockSpec((c1, L), lambda t: (0, t)),        # x tile
                pl.BlockSpec((c_, c1), lambda t: (0, 0)),       # cv1 weight
                pl.BlockSpec((c_, 1), lambda t: (0, 0)),        # cv1 bias
                pl.BlockSpec((c2, 4 * c_), lambda t: (0, 0)),   # cv2 weight
                pl.BlockSpec((c2, 1), lambda t: (0, 0)),        # cv2 bias
                pl.BlockSpec((8, L), lambda t: (0, 0)),         # pooling masks
            ],
            out_specs=pl.BlockSpec((c2, L), lambda t: (0, t)),
            scratch_shapes=[pltpu.VMEM((4 * c_, L), jnp.float32)],
        ),
        compiler_params=pltpu.CompilerParams(
            dimension_semantics=("parallel",),
        ),
    )(x_cm, w1f, b1f, w2f, b2f, jnp.asarray(add_mask))

    return out_cm.reshape(c2, N, H, W).transpose(1, 0, 2, 3)


# ----------------------------------------------------------------------------
# Pure-JAX reference (direct 5/9/13 max pools) for correctness check
# ----------------------------------------------------------------------------
def spp_reference(x_nchw, params, ks=(5, 9, 13)):
    x = x_nchw.astype(jnp.float32)
    w1, s1, b1 = params["cv1"]
    w2, s2, b2 = params["cv2"]

    def conv1x1_bn_silu(inp, w, s, b):
        z = jnp.einsum("oc,nchw->nohw", w, inp)
        z = z * s.reshape(1, -1, 1, 1) + b.reshape(1, -1, 1, 1)
        return z * jax.nn.sigmoid(z)

    def maxpool(a, k):
        p = k // 2
        return jax.lax.reduce_window(
            a, -jnp.inf, jax.lax.max,
            window_dimensions=(1, 1, k, k),
            window_strides=(1, 1, 1, 1),
            padding=((0, 0), (0, 0), (p, p), (p, p)))

    y = conv1x1_bn_silu(x, w1, s1, b1)
    cat = jnp.concatenate([y] + [maxpool(y, k) for k in ks], axis=1)
    return conv1x1_bn_silu(cat, w2, s2, b2)


# ----------------------------------------------------------------------------
# Deterministic parameter construction (eval-mode BN as per-channel scale/bias)
# ----------------------------------------------------------------------------
def make_bn_params(key, c, eps=1e-5):
    k1, k2, k3, k4 = jax.random.split(key, 4)
    gamma = jax.random.uniform(k1, (c,), minval=0.5, maxval=1.5)
    beta = jax.random.normal(k2, (c,)) * 0.1
    mean = jax.random.normal(k3, (c,)) * 0.1
    var = jax.random.uniform(k4, (c,), minval=0.5, maxval=1.5)
    scale = gamma / jnp.sqrt(var + eps)
    bias = beta - mean * scale
    return (scale.reshape(c, 1).astype(jnp.float32),
            bias.reshape(c, 1).astype(jnp.float32))


def make_spp_params(key, c1, c2, n_pool=3):
    c_ = c1 // 2
    k1, k2, k3, k4 = jax.random.split(key, 4)
    w1 = (jax.random.normal(k1, (c_, c1)) * 0.3).astype(jnp.float32)
    s1, b1 = make_bn_params(k2, c_)
    w2 = (jax.random.normal(k3, (c2, c_ * (n_pool + 1))) * 0.2).astype(jnp.float32)
    s2, b2 = make_bn_params(k4, c2)
    return {"cv1": (w1, s1, b1), "cv2": (w2, s2, b2)}


if __name__ == "__main__":
    # Small shapes consistent with SPP: batch=2, c1=8 (-> hidden c_=4), c2=32, 16x16
    N, C1_IN, C2_OUT, H, W = 2, 8, 32, 16, 16

    key = jax.random.PRNGKey(0)
    k_x, k_p = jax.random.split(key)
    x = jax.random.normal(k_x, (N, C1_IN, H, W), dtype=jnp.float32)  # NCHW like PyTorch
    params = make_spp_params(k_p, C1_IN, C2_OUT)

    out = jax.block_until_ready(spp_forward(x, params))
    ref = jax.block_until_ready(spp_reference(x, params))

    np.testing.assert_allclose(np.asarray(out), np.asarray(ref), rtol=2e-4, atol=2e-4)
    assert out.shape == (N, C2_OUT, H, W)

    print("KERNEL_OK")
</pallas_src>

<mosaic_0001>
module attributes {stable_mosaic.version = 11 : i64} {
  func.func @_spp_kernel(%arg0: i32, %arg1: memref<8x256xf32, #tpu.memory_space<vmem>>, %arg2: memref<4x8xf32, #tpu.memory_space<vmem>>, %arg3: memref<4x1xf32, #tpu.memory_space<vmem>>, %arg4: memref<32x16xf32, #tpu.memory_space<vmem>>, %arg5: memref<32x1xf32, #tpu.memory_space<vmem>>, %arg6: memref<8x256xf32, #tpu.memory_space<vmem>>, %arg7: memref<32x256xf32, #tpu.memory_space<vmem>>, %arg8: memref<16x256xf32, #tpu.memory_space<vmem>>) attributes {dimension_semantics = [#tpu.dimension_semantics<parallel>], iteration_bounds = array<i64: 2>, scalar_prefetch = 0 : i64, scratch_operands = 1 : i64, tpu.core_type = #tpu.core_type<tc>, window_params = [{transform_indices = @transform_0, window_bounds = array<i64: 8, 256>}, {pipeline_mode = #tpu.pipeline_mode<synchronous>, transform_indices = @transform_1, window_bounds = array<i64: 4, 8>}, {pipeline_mode = #tpu.pipeline_mode<synchronous>, transform_indices = @transform_2, window_bounds = array<i64: 4, 1>}, {pipeline_mode = #tpu.pipeline_mode<synchronous>, transform_indices = @transform_3, window_bounds = array<i64: 32, 16>}, {pipeline_mode = #tpu.pipeline_mode<synchronous>, transform_indices = @transform_4, window_bounds = array<i64: 32, 1>}, {pipeline_mode = #tpu.pipeline_mode<synchronous>, transform_indices = @transform_5, window_bounds = array<i64: 8, 256>}, {transform_indices = @transform_6, window_bounds = array<i64: 32, 256>}]} {
    %c0 = arith.constant 0 : index
    %c0_0 = arith.constant 0 : index
    %0 = vector.load %arg2[%c0, %c0_0] : memref<4x8xf32, #tpu.memory_space<vmem>>, vector<4x8xf32>
    %c0_1 = arith.constant 0 : index
    %c0_2 = arith.constant 0 : index
    %1 = vector.load %arg1[%c0_1, %c0_2] : memref<8x256xf32, #tpu.memory_space<vmem>>, vector<8x256xf32>
    %cst = arith.constant dense<0.000000e+00> : vector<4x256xf32>
    %2 = tpu.matmul %0, %1, %cst {dimension_numbers = #tpu.dot_dimension_numbers<[1], [0], [0], [1], [0, 0, 1, 1], [], []>} : vector<4x8xf32>, vector<8x256xf32>, vector<4x256xf32> -> vector<4x256xf32>
    %c0_3 = arith.constant 0 : index
    %c0_4 = arith.constant 0 : index
    %3 = vector.load %arg3[%c0_3, %c0_4] : memref<4x1xf32, #tpu.memory_space<vmem>>, vector<4x1xf32>
    %4 = vector.broadcast %3 : vector<4x1xf32> to vector<4x256xf32>
    %5 = arith.addf %2, %4 : vector<4x256xf32>
    %6 = arith.negf %5 : vector<4x256xf32>
    %7 = math.exp %6 : vector<4x256xf32>
    %cst_5 = arith.constant 1.000000e+00 : f32
    %8 = vector.broadcast %cst_5 : f32 to vector<4x256xf32>
    %9 = arith.addf %8, %7 : vector<4x256xf32>
    %10 = arith.divf %8, %9 : vector<4x256xf32>
    %11 = arith.mulf %5, %10 : vector<4x256xf32>
    %c0_6 = arith.constant 0 : index
    %c0_7 = arith.constant 0 : index
    %12 = vector.load %arg6[%c0_6, %c0_7] : memref<8x256xf32, #tpu.memory_space<vmem>>, vector<1x256xf32>
    %13 = vector.shape_cast %12 : vector<1x256xf32> to vector<1x256xf32>
    %14 = vector.broadcast %13 : vector<1x256xf32> to vector<4x256xf32>
    %c1 = arith.constant 1 : index
    %c0_8 = arith.constant 0 : index
    %15 = vector.load %arg6[%c1, %c0_8] : memref<8x256xf32, #tpu.memory_space<vmem>>, vector<1x256xf32>
    %16 = vector.shape_cast %15 : vector<1x256xf32> to vector<1x256xf32>
    %17 = vector.broadcast %16 : vector<1x256xf32> to vector<4x256xf32>
    %c2 = arith.constant 2 : index
    %c0_9 = arith.constant 0 : index
    %18 = vector.load %arg6[%c2, %c0_9] : memref<8x256xf32, #tpu.memory_space<vmem>>, vector<1x256xf32>
    %19 = vector.shape_cast %18 : vector<1x256xf32> to vector<1x256xf32>
    %20 = vector.broadcast %19 : vector<1x256xf32> to vector<4x256xf32>
    %c3 = arith.constant 3 : index
    %c0_10 = arith.constant 0 : index
    %21 = vector.load %arg6[%c3, %c0_10] : memref<8x256xf32, #tpu.memory_space<vmem>>, vector<1x256xf32>
    %22 = vector.shape_cast %21 : vector<1x256xf32> to vector<1x256xf32>
    %23 = vector.broadcast %22 : vector<1x256xf32> to vector<4x256xf32>
    %c4 = arith.constant 4 : index
    %c0_11 = arith.constant 0 : index
    %24 = vector.load %arg6[%c4, %c0_11] : memref<8x256xf32, #tpu.memory_space<vmem>>, vector<1x256xf32>
    %25 = vector.shape_cast %24 : vector<1x256xf32> to vector<1x256xf32>
    %26 = vector.broadcast %25 : vector<1x256xf32> to vector<4x256xf32>
    %c5 = arith.constant 5 : index
    %c0_12 = arith.constant 0 : index
    %27 = vector.load %arg6[%c5, %c0_12] : memref<8x256xf32, #tpu.memory_space<vmem>>, vector<1x256xf32>
    %28 = vector.shape_cast %27 : vector<1x256xf32> to vector<1x256xf32>
    %29 = vector.broadcast %28 : vector<1x256xf32> to vector<4x256xf32>
    %c6 = arith.constant 6 : index
    %c0_13 = arith.constant 0 : index
    %30 = vector.load %arg6[%c6, %c0_13] : memref<8x256xf32, #tpu.memory_space<vmem>>, vector<1x256xf32>
    %31 = vector.shape_cast %30 : vector<1x256xf32> to vector<1x256xf32>
    %32 = vector.broadcast %31 : vector<1x256xf32> to vector<4x256xf32>
    %c7 = arith.constant 7 : index
    %c0_14 = arith.constant 0 : index
    %33 = vector.load %arg6[%c7, %c0_14] : memref<8x256xf32, #tpu.memory_space<vmem>>, vector<1x256xf32>
    %34 = vector.shape_cast %33 : vector<1x256xf32> to vector<1x256xf32>
    %35 = vector.broadcast %34 : vector<1x256xf32> to vector<4x256xf32>
    %c2_i32 = arith.constant 2 : i32
    %36 = tpu.dynamic_rotate %11 by %c2_i32 dim 1 : vector<4x256xf32>, i32 -> vector<4x256xf32>
    %37 = arith.addf %36, %14 : vector<4x256xf32>
    %38 = arith.maximumf %11, %37 : vector<4x256xf32>
    %c1_i32 = arith.constant 1 : i32
    %39 = tpu.dynamic_rotate %11 by %c1_i32 dim 1 : vector<4x256xf32>, i32 -> vector<4x256xf32>
    %40 = arith.addf %39, %17 : vector<4x256xf32>
    %41 = arith.maximumf %38, %40 : vector<4x256xf32>
    %c255_i32 = arith.constant 255 : i32
    %42 = tpu.dynamic_rotate %11 by %c255_i32 dim 1 : vector<4x256xf32>, i32 -> vector<4x256xf32>
    %43 = arith.addf %42, %20 : vector<4x256xf32>
    %44 = arith.maximumf %41, %43 : vector<4x256xf32>
    %c254_i32 = arith.constant 254 : i32
    %45 = tpu.dynamic_rotate %11 by %c254_i32 dim 1 : vector<4x256xf32>, i32 -> vector<4x256xf32>
    %46 = arith.addf %45, %23 : vector<4x256xf32>
    %47 = arith.maximumf %44, %46 : vector<4x256xf32>
    %c32_i32 = arith.constant 32 : i32
    %48 = tpu.dynamic_rotate %47 by %c32_i32 dim 1 : vector<4x256xf32>, i32 -> vector<4x256xf32>
    %49 = arith.addf %48, %26 : vector<4x256xf32>
    %50 = arith.maximumf %47, %49 : vector<4x256xf32>
    %c16_i32 = arith.constant 16 : i32
    %51 = tpu.dynamic_rotate %47 by %c16_i32 dim 1 : vector<4x256xf32>, i32 -> vector<4x256xf32>
    %52 = arith.addf %51, %29 : vector<4x256xf32>
    %53 = arith.maximumf %50, %52 : vector<4x256xf32>
    %c240_i32 = arith.constant 240 : i32
    %54 = tpu.dynamic_rotate %47 by %c240_i32 dim 1 : vector<4x256xf32>, i32 -> vector<4x256xf32>
    %55 = arith.addf %54, %32 : vector<4x256xf32>
    %56 = arith.maximumf %53, %55 : vector<4x256xf32>
    %c224_i32 = arith.constant 224 : i32
    %57 = tpu.dynamic_rotate %47 by %c224_i32 dim 1 : vector<4x256xf32>, i32 -> vector<4x256xf32>
    %58 = arith.addf %57, %35 : vector<4x256xf32>
    %59 = arith.maximumf %56, %58 : vector<4x256xf32>
    %c2_i32_15 = arith.constant 2 : i32
    %60 = tpu.dynamic_rotate %59 by %c2_i32_15 dim 1 : vector<4x256xf32>, i32 -> vector<4x256xf32>
    %61 = arith.addf %60, %14 : vector<4x256xf32>
    %62 = arith.maximumf %59, %61 : vector<4x256xf32>
    %c1_i32_16 = arith.constant 1 : i32
    %63 = tpu.dynamic_rotate %59 by %c1_i32_16 dim 1 : vector<4x256xf32>, i32 -> vector<4x256xf32>
    %64 = arith.addf %63, %17 : vector<4x256xf32>
    %65 = arith.maximumf %62, %64 : vector<4x256xf32>
    %c255_i32_17 = arith.constant 255 : i32
    %66 = tpu.dynamic_rotate %59 by %c255_i32_17 dim 1 : vector<4x256xf32>, i32 -> vector<4x256xf32>
    %67 = arith.addf %66, %20 : vector<4x256xf32>
    %68 = arith.maximumf %65, %67 : vector<4x256xf32>
    %c254_i32_18 = arith.constant 254 : i32
    %69 = tpu.dynamic_rotate %59 by %c254_i32_18 dim 1 : vector<4x256xf32>, i32 -> vector<4x256xf32>
    %70 = arith.addf %69, %23 : vector<4x256xf32>
    %71 = arith.maximumf %68, %70 : vector<4x256xf32>
    %c32_i32_19 = arith.constant 32 : i32
    %72 = tpu.dynamic_rotate %71 by %c32_i32_19 dim 1 : vector<4x256xf32>, i32 -> vector<4x256xf32>
    %73 = arith.addf %72, %26 : vector<4x256xf32>
    %74 = arith.maximumf %71, %73 : vector<4x256xf32>
    %c16_i32_20 = arith.constant 16 : i32
    %75 = tpu.dynamic_rotate %71 by %c16_i32_20 dim 1 : vector<4x256xf32>, i32 -> vector<4x256xf32>
    %76 = arith.addf %75, %29 : vector<4x256xf32>
    %77 = arith.maximumf %74, %76 : vector<4x256xf32>
    %c240_i32_21 = arith.constant 240 : i32
    %78 = tpu.dynamic_rotate %71 by %c240_i32_21 dim 1 : vector<4x256xf32>, i32 -> vector<4x256xf32>
    %79 = arith.addf %78, %32 : vector<4x256xf32>
    %80 = arith.maximumf %77, %79 : vector<4x256xf32>
    %c224_i32_22 = arith.constant 224 : i32
    %81 = tpu.dynamic_rotate %71 by %c224_i32_22 dim 1 : vector<4x256xf32>, i32 -> vector<4x256xf32>
    %82 = arith.addf %81, %35 : vector<4x256xf32>
    %83 = arith.maximumf %80, %82 : vector<4x256xf32>
    %c2_i32_23 = arith.constant 2 : i32
    %84 = tpu.dynamic_rotate %83 by %c2_i32_23 dim 1 : vector<4x256xf32>, i32 -> vector<4x256xf32>
    %85 = arith.addf %84, %14 : vector<4x256xf32>
    %86 = arith.maximumf %83, %85 : vector<4x256xf32>
    %c1_i32_24 = arith.constant 1 : i32
    %87 = tpu.dynamic_rotate %83 by %c1_i32_24 dim 1 : vector<4x256xf32>, i32 -> vector<4x256xf32>
    %88 = arith.addf %87, %17 : vector<4x256xf32>
    %89 = arith.maximumf %86, %88 : vector<4x256xf32>
    %c255_i32_25 = arith.constant 255 : i32
    %90 = tpu.dynamic_rotate %83 by %c255_i32_25 dim 1 : vector<4x256xf32>, i32 -> vector<4x256xf32>
    %91 = arith.addf %90, %20 : vector<4x256xf32>
    %92 = arith.maximumf %89, %91 : vector<4x256xf32>
    %c254_i32_26 = arith.constant 254 : i32
    %93 = tpu.dynamic_rotate %83 by %c254_i32_26 dim 1 : vector<4x256xf32>, i32 -> vector<4x256xf32>
    %94 = arith.addf %93, %23 : vector<4x256xf32>
    %95 = arith.maximumf %92, %94 : vector<4x256xf32>
    %c32_i32_27 = arith.constant 32 : i32
    %96 = tpu.dynamic_rotate %95 by %c32_i32_27 dim 1 : vector<4x256xf32>, i32 -> vector<4x256xf32>
    %97 = arith.addf %96, %26 : vector<4x256xf32>
    %98 = arith.maximumf %95, %97 : vector<4x256xf32>
    %c16_i32_28 = arith.constant 16 : i32
    %99 = tpu.dynamic_rotate %95 by %c16_i32_28 dim 1 : vector<4x256xf32>, i32 -> vector<4x256xf32>
    %100 = arith.addf %99, %29 : vector<4x256xf32>
    %101 = arith.maximumf %98, %100 : vector<4x256xf32>
    %c240_i32_29 = arith.constant 240 : i32
    %102 = tpu.dynamic_rotate %95 by %c240_i32_29 dim 1 : vector<4x256xf32>, i32 -> vector<4x256xf32>
    %103 = arith.addf %102, %32 : vector<4x256xf32>
    %104 = arith.maximumf %101, %103 : vector<4x256xf32>
    %c224_i32_30 = arith.constant 224 : i32
    %105 = tpu.dynamic_rotate %95 by %c224_i32_30 dim 1 : vector<4x256xf32>, i32 -> vector<4x256xf32>
    %106 = arith.addf %105, %35 : vector<4x256xf32>
    %107 = arith.maximumf %104, %106 : vector<4x256xf32>
    %c0_31 = arith.constant 0 : index
    %c0_32 = arith.constant 0 : index
    %108 = vector.load %arg8[%c0_31, %c0_32] : memref<16x256xf32, #tpu.memory_space<vmem>>, vector<4x256xf32>
    tpu.vector_store %arg8[%c0_31, %c0_32], %11 {strides = array<i32>} : memref<16x256xf32, #tpu.memory_space<vmem>>, vector<4x256xf32>,
    %c4_33 = arith.constant 4 : index
    %c0_34 = arith.constant 0 : index
    %109 = vector.load %arg8[%c4_33, %c0_34] : memref<16x256xf32, #tpu.memory_space<vmem>>, vector<4x256xf32>
    tpu.vector_store %arg8[%c4_33, %c0_34], %59 {strides = array<i32>} : memref<16x256xf32, #tpu.memory_space<vmem>>, vector<4x256xf32>,
    %c8 = arith.constant 8 : index
    %c0_35 = arith.constant 0 : index
    %110 = vector.load %arg8[%c8, %c0_35] : memref<16x256xf32, #tpu.memory_space<vmem>>, vector<4x256xf32>
    tpu.vector_store %arg8[%c8, %c0_35], %83 {strides = array<i32>} : memref<16x256xf32, #tpu.memory_space<vmem>>, vector<4x256xf32>,
    %c12 = arith.constant 12 : index
    %c0_36 = arith.constant 0 : index
    %111 = vector.load %arg8[%c12, %c0_36] : memref<16x256xf32, #tpu.memory_space<vmem>>, vector<4x256xf32>
    tpu.vector_store %arg8[%c12, %c0_36], %107 {strides = array<i32>} : memref<16x256xf32, #tpu.memory_space<vmem>>, vector<4x256xf32>,
    %c0_37 = arith.constant 0 : index
    %c0_38 = arith.constant 0 : index
    %112 = vector.load %arg4[%c0_37, %c0_38] : memref<32x16xf32, #tpu.memory_space<vmem>>, vector<32x16xf32>
    %c0_39 = arith.constant 0 : index
    %c0_40 = arith.constant 0 : index
    %113 = vector.load %arg8[%c0_39, %c0_40] : memref<16x256xf32, #tpu.memory_space<vmem>>, vector<16x256xf32>
    %cst_41 = arith.constant dense<0.000000e+00> : vector<32x256xf32>
    %114 = tpu.matmul %112, %113, %cst_41 {dimension_numbers = #tpu.dot_dimension_numbers<[1], [0], [0], [1], [0, 0, 1, 1], [], []>} : vector<32x16xf32>, vector<16x256xf32>, vector<32x256xf32> -> vector<32x256xf32>
    %c0_42 = arith.constant 0 : index
    %c0_43 = arith.constant 0 : index
    %115 = vector.load %arg5[%c0_42, %c0_43] : memref<32x1xf32, #tpu.memory_space<vmem>>, vector<32x1xf32>
    %116 = vector.broadcast %115 : vector<32x1xf32> to vector<32x256xf32>
    %117 = arith.addf %114, %116 : vector<32x256xf32>
    %118 = arith.negf %117 : vector<32x256xf32>
    %119 = math.exp %118 : vector<32x256xf32>
    %cst_44 = arith.constant 1.000000e+00 : f32
    %120 = vector.broadcast %cst_44 : f32 to vector<32x256xf32>
    %121 = arith.addf %120, %119 : vector<32x256xf32>
    %122 = arith.divf %120, %121 : vector<32x256xf32>
    %123 = arith.mulf %117, %122 : vector<32x256xf32>
    %c0_45 = arith.constant 0 : index
    %c0_46 = arith.constant 0 : index
    %124 = vector.load %arg7[%c0_45, %c0_46] : memref<32x256xf32, #tpu.memory_space<vmem>>, vector<32x256xf32>
    tpu.vector_store %arg7[%c0_45, %c0_46], %123 {strides = array<i32>} : memref<32x256xf32, #tpu.memory_space<vmem>>, vector<32x256xf32>,
    return
  }
  func.func @transform_0(%arg0: i32) -> (i32, i32) {
    %c0_i32 = arith.constant 0 : i32
    %c0_i32_0 = arith.constant 0 : i32
    return %c0_i32, %arg0 : i32, i32
  }
  func.func @transform_1(%arg0: i32) -> (i32, i32) {
    %c0_i32 = arith.constant 0 : i32
    %c0_i32_0 = arith.constant 0 : i32
    %c0_i32_1 = arith.constant 0 : i32
    return %c0_i32, %c0_i32_0 : i32, i32
  }
  func.func @transform_2(%arg0: i32) -> (i32, i32) {
    %c0_i32 = arith.constant 0 : i32
    %c0_i32_0 = arith.constant 0 : i32
    %c0_i32_1 = arith.constant 0 : i32
    return %c0_i32, %c0_i32_0 : i32, i32
  }
  func.func @transform_3(%arg0: i32) -> (i32, i32) {
    %c0_i32 = arith.constant 0 : i32
    %c0_i32_0 = arith.constant 0 : i32
    %c0_i32_1 = arith.constant 0 : i32
    return %c0_i32, %c0_i32_0 : i32, i32
  }
  func.func @transform_4(%arg0: i32) -> (i32, i32) {
    %c0_i32 = arith.constant 0 : i32
    %c0_i32_0 = arith.constant 0 : i32
    %c0_i32_1 = arith.constant 0 : i32
    return %c0_i32, %c0_i32_0 : i32, i32
  }
  func.func @transform_5(%arg0: i32) -> (i32, i32) {
    %c0_i32 = arith.constant 0 : i32
    %c0_i32_0 = arith.constant 0 : i32
    %c0_i32_1 = arith.constant 0 : i32
    return %c0_i32, %c0_i32_0 : i32, i32
  }
  func.func @transform_6(%arg0: i32) -> (i32, i32) {
    %c0_i32 = arith.constant 0 : i32
    %c0_i32_0 = arith.constant 0 : i32
    return %c0_i32, %arg0 : i32, i32
  }
}

</mosaic_0001>

<bundles_post_ra>
// kernel: tpu_custom_call.1
= control target key start
LH: loop header
LB: loop body
LE: loop exit
PB: predicated region body
PF: predicated region fallthrough
CT: control target
= control target key end

     0   :  { %11 = vsyncpa [#allocation4], 0  ;;  %s1659_s0 = inlined_call_operand.vmem [shape: f32[8,512], index: 0, kind: input, shape index: {}]   ;;  %s1660_s1 = inlined_call_operand.vmem [shape: f32[4,8], index: 1, kind: input, shape index: {}]   ;;  %s1661_s2 = inlined_call_operand.vmem [shape: f32[4,1], index: 2, kind: input, shape index: {}]   ;;  %s1662_s3 = inlined_call_operand.vmem [shape: f32[32,16], index: 3, kind: input, shape index: {}]   ;;  %s1663_s4 = inlined_call_operand.vmem [shape: f32[32,1], index: 4, kind: input, shape index: {}]   ;;  %s1664_s5 = inlined_call_operand.vmem [shape: f32[8,256], index: 5, kind: input, shape index: {}]   ;;  %s1665_s6 = inlined_call_operand.hbm [shape: f32[32,512], index: 6, kind: output, shape index: {}]  }
   0x1   :  { %13 = vsyncpa [#allocation4 + $0x1], 0  ;;  %s1240_s21 = smov 0   ;;  %s1242_s22 = smov 0  }
   0x2   :  { %s1244_s23 = smov 0   ;;  %s1246_s24 = smov 0  }
   0x3 LB: > { %s1261_s25 = sadd.s32 4294967295, %s1190_s24   ;;  %s998_s26 = sadd.s32 4294967294, %s1190_s24   ;;  %s1190_s24 = sphi %s1246_s24, %s1671_s24   ;;  %s1186_s23 = sphi %s1244_s23, %s1670_s23   ;;  %s1182_s22 = sphi %s1242_s22, %s1669_s22   ;;  %s1178_s21 = sphi %s1240_s21, %s1668_s21  }
   0x4   : > { %s1265_s27 = sadd.s32 1, %s1190_s24   ;;  %s157_s28 = sadd.s32 1, %s1186_s23 }
   0x5   : > { %s154_s29 = ssub.s32 %s1190_s24, %s1265_s27  ;;  %p167_p0 = scmp.ne.s32.totalorder %s1186_s23, %s1182_s22 }
   0x6   : > { %p155_p1 = scmp.eq.s32.totalorder %s154_s29, 0  ;;  %p168_p2 = scmp.eq.s32.totalorder %s1261_s25, 1 }
   0x7   : > { %p173_p3 = scmp.ne.s32.totalorder %s1182_s22, %s1178_s21  ;;  %p174_p4 = scmp.eq.s32.totalorder %s998_s26, 1 }
   0x8   : > { %s1276_s30 = scalar_select %p155_p1, %s1186_s23, %s157_s28  }
   0x9   : > { %p1278_p5 = por %p168_p2, %p167_p0  ;;  %p1282_p6 = por %p174_p4, %p173_p3 }
   0xa   : > { %p1001_p7 = scmp.ge.s32.totalorder %s1190_s24, 1  ;;  %p216_p8 = scmp.lt.s32.totalorder %s1190_s24, 3 }
   0xc   : > { %p217_p9 = pnand %p1001_p7, %p216_p8 }
   0xd   : > { %s1003_s9 = sshll.u32 (!%p217_p9), %s1261_s25, 1  ;;  %s1194_s18 = smov (!%p217_p9), 1  }
   0xe   : > { %220 = sbr.rel (%p217_p9) target bundleno = 1313 (0x521), region = 44  ;;  %p247_p10 = scmp.lt.s32.totalorder (!%p217_p9), %s1003_s9, 3 }
   0xf   : > { %s1195_s19 = smov (!%p217_p9), 2   ;;  %s1196_s20 = smov (!%p217_p9), 127  }
  0x10   : > { %s1197_s26 = smov (!%p217_p9), 126   ;;  %s1199_s16 = smov (!%p217_p9), 16  }
  0x11   : > { %s1200_s17 = smov (!%p217_p9), 112   ;;  %s1201_s28 = smov (!%p217_p9), 96  }
  0x12   : > { %s1202_s13 = smov (!%p217_p9), [#allocation3]  }
  0x13   : > { %v1192_v0 = vmov 0.0   ;;  %v1193_v1 = vmov 0   ;;  %v256_v2 = vld [vmem:[%s1661_s2] sm:$0xf]  ;;  %s1673_s9 = smov (!%p247_p10, %s1003_s9), 3  ;;  %vm262_vm0 = vcmask 64512   ;;  %v353_v21 = vlaneseq }
  0x14   : > { %330 = vmatprep.mubr.f32.mxu0 %v1192_v0  ;;  %1088 = vset.pattern.permute.xlu0 %v1193_v1  ;;  %s1004_s12 = sshll.u32 %s1673_s9, 3  ;;  %v253_v5 = vld [vmem:[%s1660_s1] sm:$0xf]  ;;  %vm756_vm9 = vcmask 130048   ;;  %s1134_s14 = sshll.u32 %s1202_s13, 4  ;;  %s1135_s14 = int_to_ptr.vmem [resolvable:$false] %s1134_s14 }
  0x15   : > { %259 = vperm.xlu0 %1088, %v256_v2   ;;  %839 = vmatprep.mubr.f32.mxu1 %v1192_v0  ;;  %s250_s15 = scalar_lea.vmem %s1659_s0, %s1004_s12  ;;  %v354_v22 = vshrl.u32 %v353_v21, 7  ;;  %v1313_v25 = vand.u32 127, %v353_v21  ;;  %v351_v26 = vld [vmem:[%s1664_s5] ss:$8 sm:$0x3]  ;;  %s1136_s29 = scalar_lea.vmem %s1135_s14, 2048 }
  0x16   : > { %1089 = vset.pattern.permute.xlu1 %v1193_v1  ;;  %v255_v3 = vld [vmem:[%s250_s15 + $0x8] sm:$0xff]  ;;  %v254_v4 = vld [vmem:[%s250_s15] sm:$0xff]  ;;  %s1198_s15 = smov 32  }
  0x17   : > { %296 = vmatprep.subr.mxu0 %v255_v3  ;;  %v1309_v23 = vsub.s32 0, %v354_v22  ;;  %v1311_v24 = vsub.s32 1, %v354_v22  ;;  %v1008_v29 = vld [vmem:[%s1664_s5 + $0x1] ss:$8 sm:$0x3]  ;;  %vm460_vm1 = vcmp.lt.s32.totalorder %v1313_v25, 2 }
  0x18   : > { %297 = vmatpush1.msra.mxu0 %v254_v4  ;;  %v1009_v30 = vld [vmem:[%s1664_s5 + $0x2] ss:$8 sm:$0x3]  ;;  %vm471_vm2 = vcmp.lt.s32.totalorder %v1313_v25, 1  ;;  %vm482_vm3 = vcmp.lt.s32.totalorder %v1313_v25, 127  ;;  %vm493_vm4 = vcmp.lt.s32.totalorder %v1313_v25, 126 }
  0x19   : > { %1005 = vmatmul.mubr.msk.f32.vlgmr.msra.gmra.mxu0 %vm262_vm0, %v253_v5  ;;  %v1325_v31 = vrot.slane %v351_v26, %v1309_v23  ;;  %v1328_v32 = vrot.slane %v351_v26, %v1311_v24  ;;  %v1333_v34 = vrot.slane %v1008_v29, %v1309_v23  ;;  %v1336_v35 = vrot.slane %v1008_v29, %v1311_v24  ;;  %v1010_v38 = vld [vmem:[%s1664_s5 + $0x3] ss:$8 sm:$0x3]  ;;  %v1014_v26 = vld [vmem:[%s1664_s5 + $0x7] ss:$8 sm:$0x3] }
  0x1a   : > { %833 = vmatprep.mubr.f32.mxu0 %v1192_v0  ;;  %v1339_v37 = vrot.slane %v1009_v30, %v1309_v23  ;;  %v1355_v45 = vrot.slane %v1009_v30, %v1311_v24  ;;  %v1359_v46 = vrot.slane %v1010_v38, %v1309_v23  ;;  %v1368_v55 = vrot.slane %v1010_v38, %v1311_v24 }
  0x1b   : > { %vm504_vm5 = vcmp.lt.s32.totalorder %v1313_v25, 32  ;;  %vm515_vm6 = vcmp.lt.s32.totalorder %v1313_v25, 16  ;;  %vm526_vm7 = vcmp.lt.s32.totalorder %v1313_v25, 112  ;;  %vm537_vm8 = vcmp.lt.s32.totalorder %v1313_v25, 96 }
  0x90   : > { %v260_v6 = vpop.permute.xlu0 %259 }
  0xd9   : > { %v332_v7 = vpop.f32.mrf.mxu0 }
  0xda   : > { %v333_v8 = vadd.f32 %v332_v7, %v260_v6  ;;  %v1011_v7 = vld [vmem:[%s1664_s5 + $0x4] ss:$8 sm:$0x3] }
  0xdb   : > { %v334_v9 = vpop.f32.mrf.mxu0 }
  0xdc   : > { %v1006_v10 = vmul.f32 -1.442695, %v333_v8  ;;  %v335_v11 = vadd.f32 %v334_v9, %v260_v6 }
  0xde   : > { %1090 = vpow2.f32 %v1006_v10  ;;  %v1007_v12 = vmul.f32 -1.442695, %v335_v11  ;;  %v1012_v10 = vld [vmem:[%s1664_s5 + $0x5] ss:$8 sm:$0x3] }
  0xe0   : > { %1092 = vpow2.f32 %v1007_v12  ;;  %v1398_v12 = vrot.slane %v1011_v7, %v1311_v24 }
  0xeb   : > { %v1091_v13 = vpop.eup %1090 }
  0xec   : > { %v343_v14 = vadd.f32 1.0, %v1091_v13  ;;  %v1013_v13 = vld [vmem:[%s1664_s5 + $0x6] ss:$8 sm:$0x3] }
  0xed   : > { %v1093_v15 = vpop.eup %1092  ;;  %v1419_v22 = vrot.slane %v1013_v13, %v1309_v23  ;;  %v1427_v29 = vrot.slane %v1013_v13, %v1311_v24 }
  0xee   : > { %1094 = vrcp.f32 %v343_v14  ;;  %v344_v16 = vadd.f32 1.0, %v1093_v15 }
  0xf0   : > { %1096 = vrcp.f32 %v344_v16 }
  0xfb   : > { %v1095_v17 = vpop.eup %1094 }
  0xfc   : > { %v349_v18 = vmul.f32 %v1095_v17, %v333_v8  ;;  %v1409_v17 = vrot.slane %v1012_v10, %v1309_v23 }
  0xfd   : > { %v1097_v19 = vpop.eup %1096 }
  0xfe   : > { %704 = vst [vmem:[#allocation2 + $0x10] sm:$0xf] %v349_v18  ;;  %v350_v20 = vmul.f32 %v1097_v19, %v335_v11  ;;  %467 = vrot.lane.b32.xlu1 %v349_v18, %s1194_s18  ;;  %454 = vrot.lane.b32.xlu0 %v349_v18, %s1195_s19  ;;  %v1395_v11 = vrot.slane %v1011_v7, %v1309_v23 }
 0x100   : > { %705 = vst [vmem:[#allocation2] sm:$0xf] %v350_v20 }
 0x102   : > { %456 = vrot.lane.b32.xlu1 %v350_v20, %s1195_s19  ;;  %469 = vrot.lane.b32.xlu0 %v350_v20, %s1194_s18 }
 0x106   : > { %478 = vrot.lane.b32.xlu1 %v349_v18, %s1196_s20  ;;  %480 = vrot.lane.b32.xlu0 %v350_v20, %s1196_s20 }
 0x10a   : > { %489 = vrot.lane.b32.xlu1 %v349_v18, %s1197_s26  ;;  %491 = vrot.lane.b32.xlu0 %v350_v20, %s1197_s26 }
 0x170   : > { %v468_v27 = vpop.permute.xlu1 %467  ;;  %v455_v28 = vpop.permute.xlu0 %454 }
 0x174   : > { %v457_v33 = vpop.permute.xlu1 %456  ;;  %v470_v36 = vpop.permute.xlu0 %469 }
 0x175   : > { %v461_v39 = vsel %vm460_vm1, %v455_v28, %v457_v33  ;;  %v462_v40 = vsel %vm460_vm1, %v457_v33, %v455_v28  ;;  %v472_v41 = vsel %vm471_vm2, %v468_v27, %v470_v36  ;;  %v473_v42 = vsel %vm471_vm2, %v470_v36, %v468_v27 }
 0x176   : > { %v463_v43 = vadd.f32 %v462_v40, %v1325_v31  ;;  %v464_v44 = vadd.f32 %v461_v39, %v1328_v32  ;;  %v474_v49 = vadd.f32 %v473_v42, %v1333_v34  ;;  %v475_v50 = vadd.f32 %v472_v41, %v1336_v35 }
 0x177   : > { %v1433_v39 = vrot.slane %v1014_v26, %v1309_v23  ;;  %v1440_v42 = vrot.slane %v1014_v26, %v1311_v24 }
 0x178   : > { %v465_v47 = vmax.f32 %v349_v18, %v463_v43  ;;  %v466_v48 = vmax.f32 %v350_v20, %v464_v44  ;;  %v479_v51 = vpop.permute.xlu1 %478  ;;  %v481_v52 = vpop.permute.xlu0 %480  ;;  %v1412_v18 = vrot.slane %v1012_v10, %v1311_v24 }
 0x179   : > { %v483_v53 = vsel %vm482_vm3, %v479_v51, %v481_v52  ;;  %v484_v54 = vsel %vm482_vm3, %v481_v52, %v479_v51 }
 0x17a   : > { %v476_v56 = vmax.f32 %v465_v47, %v474_v49  ;;  %v477_v57 = vmax.f32 %v466_v48, %v475_v50  ;;  %v485_v58 = vadd.f32 %v483_v53, %v1339_v37  ;;  %v486_v59 = vadd.f32 %v484_v54, %v1355_v45 }
 0x17c   : > { %v490_v60 = vpop.permute.xlu1 %489  ;;  %v492_v61 = vpop.permute.xlu0 %491  ;;  %v487_v1 = vmax.f32 %v476_v56, %v485_v58  ;;  %v488_v2 = vmax.f32 %v477_v57, %v486_v59 }
 0x17d   : > { %v494_v62 = vsel %vm493_vm4, %v490_v60, %v492_v61  ;;  %v495_v63 = vsel %vm493_vm4, %v492_v61, %v490_v60 }
 0x17e   : > { %v496_v3 = vadd.f32 %v494_v62, %v1359_v46  ;;  %v497_v4 = vadd.f32 %v495_v63, %v1368_v55 }
 0x180   : > { %v498_v5 = vmax.f32 %v487_v1, %v496_v3  ;;  %v499_v6 = vmax.f32 %v488_v2, %v497_v4 }
 0x182   : > { %502 = vrot.lane.b32.xlu0 %v499_v6, %s1198_s15  ;;  %500 = vrot.lane.b32.xlu1 %v498_v5, %s1198_s15 }
 0x186   : > { %513 = vrot.lane.b32.xlu0 %v499_v6, %s1199_s16  ;;  %511 = vrot.lane.b32.xlu1 %v498_v5, %s1199_s16 }
 0x18a   : > { %524 = vrot.lane.b32.xlu0 %v499_v6, %s1200_s17  ;;  %522 = vrot.lane.b32.xlu1 %v498_v5, %s1200_s17 }
 0x18e   : > { %535 = vrot.lane.b32.xlu0 %v499_v6, %s1201_s28  ;;  %533 = vrot.lane.b32.xlu1 %v498_v5, %s1201_s28 }
 0x1f4   : > { %v503_v8 = vpop.permute.xlu0 %502  ;;  %v501_v9 = vpop.permute.xlu1 %500 }
 0x1f5   : > { %v505_v14 = vsel %vm504_vm5, %v501_v9, %v503_v8  ;;  %v506_v15 = vsel %vm504_vm5, %v503_v8, %v501_v9 }
 0x1f6   : > { %v507_v27 = vadd.f32 %v506_v15, %v1395_v11  ;;  %v508_v28 = vadd.f32 %v505_v14, %v1398_v12 }
 0x1f8   : > { %v514_v16 = vpop.permute.xlu0 %513  ;;  %v512_v19 = vpop.permute.xlu1 %511  ;;  %v509_v43 = vmax.f32 %v498_v5, %v507_v27  ;;  %v510_v44 = vmax.f32 %v499_v6, %v508_v28 }
 0x1f9   : > { %v516_v20 = vsel %vm515_vm6, %v512_v19, %v514_v16  ;;  %v517_v21 = vsel %vm515_vm6, %v514_v16, %v512_v19 }
 0x1fa   : > { %v518_v30 = vadd.f32 %v517_v21, %v1409_v17  ;;  %v519_v33 = vadd.f32 %v516_v20, %v1412_v18 }
 0x1fc   : > { %v525_v36 = vpop.permute.xlu0 %524  ;;  %v523_v38 = vpop.permute.xlu1 %522  ;;  %v520_v49 = vmax.f32 %v509_v43, %v518_v30  ;;  %v521_v23 = vmax.f32 %v510_v44, %v519_v33 }
 0x1fd   : > { %v527_v40 = vsel %vm526_vm7, %v523_v38, %v525_v36  ;;  %v528_v41 = vsel %vm526_vm7, %v525_v36, %v523_v38 }
 0x1fe   : > { %v529_v47 = vadd.f32 %v527_v40, %v1419_v22  ;;  %v530_v48 = vadd.f32 %v528_v41, %v1427_v29 }
 0x200   : > { %v536_v50 = vpop.permute.xlu0 %535  ;;  %v534_v51 = vpop.permute.xlu1 %533  ;;  %v531_v24 = vmax.f32 %v520_v49, %v529_v47  ;;  %v532_v54 = vmax.f32 %v521_v23, %v530_v48 }
 0x201   : > { %v538_v52 = vsel %vm537_vm8, %v534_v51, %v536_v50  ;;  %v539_v53 = vsel %vm537_vm8, %v536_v50, %v534_v51 }
 0x202   : > { %v540_v56 = vadd.f32 %v538_v52, %v1433_v39  ;;  %v541_v57 = vadd.f32 %v539_v53, %v1440_v42 }
 0x204   : > { %v542_v58 = vmax.f32 %v531_v24, %v540_v56  ;;  %v543_v59 = vmax.f32 %v532_v54, %v541_v57 }
 0x206   : > { %v708_v60 = vrot.slane %v542_v58, 4  ;;  %v709_v61 = vrot.slane %v543_v59, 4  ;;  %546 = vrot.lane.b32.xlu0 %v543_v59, %s1195_s19  ;;  %544 = vrot.lane.b32.xlu1 %v542_v58, %s1195_s19 }
 0x208   : > { %712 = vst [vmem:[#allocation2 + $0x10] sm:$0xf0] %v708_v60  ;;  %713 = vst [vmem:[#allocation2] sm:$0xf0] %v709_v61 }
 0x20a   : > { %556 = vrot.lane.b32.xlu0 %v543_v59, %s1194_s18  ;;  %554 = vrot.lane.b32.xlu1 %v542_v58, %s1194_s18 }
 0x20e   : > { %566 = vrot.lane.b32.xlu0 %v543_v59, %s1196_s20  ;;  %564 = vrot.lane.b32.xlu1 %v542_v58, %s1196_s20 }
 0x20f   : > { %v729_v25 = vld [vmem:[#allocation2] sm:$0xff] }
 0x212   : > { %576 = vrot.lane.b32.xlu0 %v543_v59, %s1197_s26  ;;  %574 = vrot.lane.b32.xlu1 %v542_v58, %s1197_s26 }
 0x278   : > { %v547_v62 = vpop.permute.xlu0 %546  ;;  %v545_v63 = vpop.permute.xlu1 %544 }
 0x279   : > { %v548_v1 = vsel %vm460_vm1, %v545_v63, %v547_v62  ;;  %v549_v2 = vsel %vm460_vm1, %v547_v62, %v545_v63 }
 0x27a   : > { %v550_v7 = vadd.f32 %v549_v2, %v1325_v31  ;;  %v551_v8 = vadd.f32 %v548_v1, %v1328_v32 }
 0x27c   : > { %v557_v3 = vpop.permute.xlu0 %556  ;;  %v555_v4 = vpop.permute.xlu1 %554  ;;  %v552_v19 = vmax.f32 %v542_v58, %v550_v7  ;;  %v553_v20 = vmax.f32 %v543_v59, %v551_v8 }
 0x27d   : > { %v558_v5 = vsel %vm471_vm2, %v555_v4, %v557_v3  ;;  %v559_v6 = vsel %vm471_vm2, %v557_v3, %v555_v4 }
 0x27e   : > { %v560_v9 = vadd.f32 %v559_v6, %v1333_v34  ;;  %v561_v10 = vadd.f32 %v558_v5, %v1336_v35 }
 0x280   : > { %v567_v13 = vpop.permute.xlu0 %566  ;;  %v565_v14 = vpop.permute.xlu1 %564  ;;  %v562_v27 = vmax.f32 %v552_v19, %v560_v9  ;;  %v563_v28 = vmax.f32 %v553_v20, %v561_v10 }
 0x281   : > { %v568_v15 = vsel %vm482_vm3, %v565_v14, %v567_v13  ;;  %v569_v16 = vsel %vm482_vm3, %v567_v13, %v565_v14 }
 0x282   : > { %v570_v21 = vadd.f32 %v568_v15, %v1339_v37  ;;  %v571_v26 = vadd.f32 %v569_v16, %v1355_v45 }
 0x284   : > { %v577_v30 = vpop.permute.xlu0 %576  ;;  %v575_v33 = vpop.permute.xlu1 %574  ;;  %v572_v40 = vmax.f32 %v562_v27, %v570_v21  ;;  %v573_v41 = vmax.f32 %v563_v28, %v571_v26 }
 0x285   : > { %v578_v36 = vsel %vm493_vm4, %v575_v33, %v577_v30  ;;  %v579_v38 = vsel %vm493_vm4, %v577_v30, %v575_v33 }
 0x286   : > { %v580_v43 = vadd.f32 %v578_v36, %v1359_v46  ;;  %v581_v44 = vadd.f32 %v579_v38, %v1368_v55 }
 0x288   : > { %v582_v47 = vmax.f32 %v572_v40, %v580_v43  ;;  %v583_v48 = vmax.f32 %v573_v41, %v581_v44 }
 0x28a   : > { %586 = vrot.lane.b32.xlu0 %v583_v48, %s1198_s15  ;;  %584 = vrot.lane.b32.xlu1 %v582_v47, %s1198_s15 }
 0x28e   : > { %596 = vrot.lane.b32.xlu0 %v583_v48, %s1199_s16  ;;  %594 = vrot.lane.b32.xlu1 %v582_v47, %s1199_s16 }
 0x292   : > { %606 = vrot.lane.b32.xlu0 %v583_v48, %s1200_s17  ;;  %604 = vrot.lane.b32.xlu1 %v582_v47, %s1200_s17 }
 0x296   : > { %616 = vrot.lane.b32.xlu0 %v583_v48, %s1201_s28  ;;  %614 = vrot.lane.b32.xlu1 %v582_v47, %s1201_s28 }
 0x2fc   : > { %v587_v49 = vpop.permute.xlu0 %586  ;;  %v585_v23 = vpop.permute.xlu1 %584 }
 0x2fd   : > { %v588_v50 = vsel %vm504_vm5, %v585_v23, %v587_v49  ;;  %v589_v51 = vsel %vm504_vm5, %v587_v49, %v585_v23 }
 0x2fe   : > { %v590_v56 = vadd.f32 %v589_v51, %v1395_v11  ;;  %v591_v57 = vadd.f32 %v588_v50, %v1398_v12 }
 0x300   : > { %v597_v52 = vpop.permute.xlu0 %596  ;;  %v595_v53 = vpop.permute.xlu1 %594  ;;  %v592_v1 = vmax.f32 %v582_v47, %v590_v56  ;;  %v593_v2 = vmax.f32 %v583_v48, %v591_v57 }
 0x301   : > { %v598_v24 = vsel %vm515_vm6, %v595_v53, %v597_v52  ;;  %v599_v54 = vsel %vm515_vm6, %v597_v52, %v595_v53 }
 0x302   : > { %v600_v58 = vadd.f32 %v599_v54, %v1409_v17  ;;  %v601_v59 = vadd.f32 %v598_v24, %v1412_v18 }
 0x304   : > { %v607_v60 = vpop.permute.xlu0 %606  ;;  %v605_v61 = vpop.permute.xlu1 %604  ;;  %v602_v5 = vmax.f32 %v592_v1, %v600_v58  ;;  %v603_v6 = vmax.f32 %v593_v2, %v601_v59 }
 0x305   : > { %v608_v62 = vsel %vm526_vm7, %v605_v61, %v607_v60  ;;  %v609_v63 = vsel %vm526_vm7, %v607_v60, %v605_v61  ;;  %v734_v61 = vld [vmem:[%s1663_s4 + $0x10] sm:$0xff] }
 0x306   : > { %v610_v3 = vadd.f32 %v608_v62, %v1419_v22  ;;  %v611_v4 = vadd.f32 %v609_v63, %v1427_v29 }
 0x308   : > { %v617_v7 = vpop.permute.xlu0 %616  ;;  %v615_v8 = vpop.permute.xlu1 %614  ;;  %v612_v13 = vmax.f32 %v602_v5, %v610_v3  ;;  %v613_v14 = vmax.f32 %v603_v6, %v611_v4 }
 0x309   : > { %v618_v9 = vsel %vm537_vm8, %v615_v8, %v617_v7  ;;  %v619_v10 = vsel %vm537_vm8, %v617_v7, %v615_v8 }
 0x30a   : > { %v620_v15 = vadd.f32 %v618_v9, %v1433_v39  ;;  %v621_v16 = vadd.f32 %v619_v10, %v1440_v42 }
 0x30c   : > { %v622_v19 = vmax.f32 %v612_v13, %v620_v15  ;;  %v623_v20 = vmax.f32 %v613_v14, %v621_v16 }
 0x30e   : > { %714 = vst [vmem:[#allocation2 + $0x18] sm:$0xf] %v622_v19  ;;  %715 = vst [vmem:[#allocation2 + $0x8] sm:$0xf] %v623_v20  ;;  %626 = vrot.lane.b32.xlu0 %v623_v20, %s1195_s19  ;;  %624 = vrot.lane.b32.xlu1 %v622_v19, %s1195_s19 }
 0x312   : > { %636 = vrot.lane.b32.xlu0 %v623_v20, %s1194_s18  ;;  %634 = vrot.lane.b32.xlu1 %v622_v19, %s1194_s18 }
 0x316   : > { %646 = vrot.lane.b32.xlu0 %v623_v20, %s1196_s20  ;;  %644 = vrot.lane.b32.xlu1 %v622_v19, %s1196_s20  ;;  %s243_s20 = sand.u32 1, %s1182_s22  }
 0x317   : > { %s1618_s12 = scalar_lea.sflag [#allocation4], %s243_s20 }
 0x31a   : > { %656 = vrot.lane.b32.xlu0 %v623_v20, %s1197_s26  ;;  %654 = vrot.lane.b32.xlu1 %v622_v19, %s1197_s26  ;;  %s1002_s26 = sshll.u32 %s243_s20, 6 }
 0x380   : > { %v627_v21 = vpop.permute.xlu0 %626  ;;  %v625_v26 = vpop.permute.xlu1 %624 }
 0x381   : > { %v628_v27 = vsel %vm460_vm1, %v625_v26, %v627_v21  ;;  %v629_v28 = vsel %vm460_vm1, %v627_v21, %v625_v26 }
 0x382   : > { %v630_v40 = vadd.f32 %v629_v28, %v1325_v31  ;;  %v631_v41 = vadd.f32 %v628_v27, %v1328_v32 }
 0x384   : > { %v637_v30 = vpop.permute.xlu0 %636  ;;  %v635_v33 = vpop.permute.xlu1 %634  ;;  %v632_v50 = vmax.f32 %v622_v19, %v630_v40  ;;  %v633_v51 = vmax.f32 %v623_v20, %v631_v41 }
 0x385   : > { %v638_v36 = vsel %vm471_vm2, %v635_v33, %v637_v30  ;;  %v639_v38 = vsel %vm471_vm2, %v637_v30, %v635_v33 }
 0x386   : > { %v640_v43 = vadd.f32 %v639_v38, %v1333_v34  ;;  %v641_v44 = vadd.f32 %v638_v36, %v1336_v35 }
 0x388   : > { %v647_v47 = vpop.permute.xlu0 %646  ;;  %v645_v48 = vpop.permute.xlu1 %644  ;;  %v642_v53 = vmax.f32 %v632_v50, %v640_v43  ;;  %v643_v32 = vmax.f32 %v633_v51, %v641_v44 }
 0x389   : > { %v648_v49 = vsel %vm482_vm3, %v645_v48, %v647_v47  ;;  %v649_v23 = vsel %vm482_vm3, %v647_v47, %v645_v48  ;;  %v724_v47 = vld [vmem:[%s1662_s3] sm:$0xff]  ;;  %v726_v48 = vld [vmem:[%s1662_s3 + $0x10] sm:$0xff] }
 0x38a   : > { %v650_v52 = vadd.f32 %v648_v49, %v1339_v37  ;;  %v651_v31 = vadd.f32 %v649_v23, %v1355_v45  ;;  %v733_v45 = vld [vmem:[%s1663_s4 + $0x8] sm:$0xff]  ;;  %v727_v49 = vld [vmem:[%s1662_s3 + $0x18] sm:$0xff] }
 0x38c   : > { %v657_v24 = vpop.permute.xlu0 %656  ;;  %v655_v34 = vpop.permute.xlu1 %654  ;;  %v652_v56 = vmax.f32 %v642_v53, %v650_v52  ;;  %v653_v57 = vmax.f32 %v643_v32, %v651_v31 }
 0x38d   : > { %v658_v35 = vsel %vm493_vm4, %v655_v34, %v657_v24  ;;  %v659_v54 = vsel %vm493_vm4, %v657_v24, %v655_v34 }
 0x38e   : > { %v660_v58 = vadd.f32 %v658_v35, %v1359_v46  ;;  %v661_v59 = vadd.f32 %v659_v54, %v1368_v55  ;;  %v735_v46 = vld [vmem:[%s1663_s4 + $0x18] sm:$0xff]  ;;  %v732_v55 = vld [vmem:[%s1663_s4] sm:$0xff] }
 0x390   : > { %v662_v60 = vmax.f32 %v652_v56, %v660_v58  ;;  %v663_v37 = vmax.f32 %v653_v57, %v661_v59 }
 0x392   : > { %666 = vrot.lane.b32.xlu0 %v663_v37, %s1198_s15  ;;  %664 = vrot.lane.b32.xlu1 %v662_v60, %s1198_s15  ;;  %s245_s15 = scalar_lea.vmem [#allocation3], %s1002_s26 }
 0x393   : > { %s936_s9 = sshll.u32 %s245_s15, 4  ;;  %s1609_s9 = int_to_ptr.vmem [resolvable:$true] %s936_s9 }
 0x394   : > { %p1137_p0 = scmp.lt.s32.totalorder %s1609_s9, %s1135_s14 }
 0x396   : > { %676 = vrot.lane.b32.xlu0 %v663_v37, %s1199_s16  ;;  %674 = vrot.lane.b32.xlu1 %v662_v60, %s1199_s16 }
 0x39a   : > { %686 = vrot.lane.b32.xlu0 %v663_v37, %s1200_s17  ;;  %684 = vrot.lane.b32.xlu1 %v662_v60, %s1200_s17  ;;  %s1032_s17 = sshll.u32 %s1261_s25, 8  ;;  %s1130_s25 = scalar_lea.vmem %s1609_s9, 1024 }
 0x39b   : > { %s1614_s11 = scalar_lea.hbm %s1665_s6, %s1032_s17  ;;  %p1131_p11 = scmp.ne.s32.totalorder %s1609_s9, %s1130_s25 }
 0x39c   : > { %p1138_p1 = scmp.lt.s32.totalorder %s1136_s29, %s1130_s25 }
 0x39d   : > { %p1132_p12 = pnand %p1131_p11, %p1278_p5 }
 0x39e   : > { %696 = vrot.lane.b32.xlu0 %v663_v37, %s1201_s28  ;;  %694 = vrot.lane.b32.xlu1 %v662_v60, %s1201_s28  ;;  %p1139_p2 = por %p1138_p1, %p1137_p0 }
 0x39f   : > { %p1133_p13 = pneg %p1132_p12 }
 0x3a1   : > { %p1140_p3 = pnand %p1139_p2, %p1133_p13 }
 0x3a2   : > { %743 = vperm.xlu0 %1088, %v733_v45   ;;  %738 = vperm.xlu1 %1089, %v732_v55  }
 0x3a6   : > { %753 = vperm.xlu0 %1088, %v735_v46   ;;  %748 = vperm.xlu1 %1089, %v734_v61  }
 0x404   : > { %v667_v62 = vpop.permute.xlu0 %666  ;;  %v665_v63 = vpop.permute.xlu1 %664 }
 0x405   : > { %v668_v1 = vsel %vm504_vm5, %v665_v63, %v667_v62  ;;  %v669_v2 = vsel %vm504_vm5, %v667_v62, %v665_v63 }
 0x406   : > { %v670_v7 = vadd.f32 %v669_v2, %v1395_v11  ;;  %v671_v8 = vadd.f32 %v668_v1, %v1398_v12 }
 0x408   : > { %v677_v3 = vpop.permute.xlu0 %676  ;;  %v675_v4 = vpop.permute.xlu1 %674  ;;  %v672_v19 = vmax.f32 %v662_v60, %v670_v7  ;;  %v673_v20 = vmax.f32 %v663_v37, %v671_v8 }
 0x409   : > { %v678_v5 = vsel %vm515_vm6, %v675_v4, %v677_v3  ;;  %v679_v6 = vsel %vm515_vm6, %v677_v3, %v675_v4 }
 0x40a   : > { %v680_v9 = vadd.f32 %v679_v6, %v1409_v17  ;;  %v681_v10 = vadd.f32 %v678_v5, %v1412_v18 }
 0x40c   : > { %v687_v13 = vpop.permute.xlu0 %686  ;;  %v685_v14 = vpop.permute.xlu1 %684  ;;  %v682_v26 = vmax.f32 %v672_v19, %v680_v9  ;;  %v683_v12 = vmax.f32 %v673_v20, %v681_v10 }
 0x40d   : > { %v688_v15 = vsel %vm526_vm7, %v685_v14, %v687_v13  ;;  %v689_v16 = vsel %vm526_vm7, %v687_v13, %v685_v14 }
 0x40e   : > { %v690_v21 = vadd.f32 %v688_v15, %v1419_v22  ;;  %v691_v11 = vadd.f32 %v689_v16, %v1427_v29 }
 0x410   : > { %v697_v27 = vpop.permute.xlu0 %696  ;;  %v695_v17 = vpop.permute.xlu1 %694  ;;  %v692_v30 = vmax.f32 %v682_v26, %v690_v21  ;;  %v693_v33 = vmax.f32 %v683_v12, %v691_v11 }
 0x411   : > { %v698_v18 = vsel %vm537_vm8, %v695_v17, %v697_v27  ;;  %v699_v28 = vsel %vm537_vm8, %v697_v27, %v695_v17 }
 0x412   : > { %v700_v36 = vadd.f32 %v698_v18, %v1433_v39  ;;  %v701_v38 = vadd.f32 %v699_v28, %v1440_v42  ;;  %v725_v39 = vld [vmem:[%s1662_s3 + $0x8] sm:$0xff]  ;;  %v728_v42 = vld [vmem:[#allocation2 + $0x10] sm:$0xff] }
 0x414   : > { %v702_v40 = vmax.f32 %v692_v30, %v700_v36  ;;  %v703_v22 = vmax.f32 %v693_v33, %v701_v38 }
 0x416   : > { %v718_v41 = vrot.slane %v702_v40, 4  ;;  %v719_v29 = vrot.slane %v703_v22, 4 }
 0x418   : > { %722 = vst [vmem:[#allocation2 + $0x18] sm:$0xf0] %v718_v41  ;;  %723 = vst [vmem:[#allocation2 + $0x8] sm:$0xf0] %v719_v29 }
 0x41d   : > { %v739_v23 = vpop.permute.xlu1 %738  ;;  %v744_v50 = vpop.permute.xlu0 %743 }
 0x41f   : > { %v731_v43 = vld [vmem:[#allocation2 + $0x8] sm:$0xff]  ;;  %v730_v44 = vld [vmem:[#allocation2 + $0x18] sm:$0xff] }
 0x420   : > { %797 = vmatprep.subr.mxu0 %v731_v43  ;;  %1033 = vmatprep.subr.mxu1 %v731_v43 }
 0x421   : > { %798 = vmatpush1.msra.mxu0 %v730_v44  ;;  %1035 = vmatpush1.msra.mxu1 %v730_v44  ;;  %v749_v32 = vpop.permute.xlu1 %748  ;;  %v754_v55 = vpop.permute.xlu0 %753 }
 0x422   : > { %799 = vmatprep.subr.mxu0 %v729_v25  ;;  %1034 = vmatprep.subr.mxu1 %v729_v25 }
 0x423   : > { %800 = vmatpush1.msra.mxu0 %v728_v42  ;;  %1036 = vmatpush1.msra.mxu1 %v728_v42 }
 0x424   : > { %1015 = vmatmul.mubr.msk.f32.vlgmr.msra.gmra.mxu0 %vm756_vm9, %v724_v47  ;;  %1016 = vmatmul.mubr.msk.f32.vlgmr.msra.gmra.mxu1 %vm756_vm9, %v725_v39 }
 0x425   : > { %845 = vmatprep.mubr.f32.mxu1 %v1192_v0 }
 0x428   : > { %1017 = vmatmul.mubr.msk.f32.gmra.mxu1 %vm756_vm9, %v726_v48 }
 0x429   : > { %851 = vmatprep.mubr.f32.mxu1 %v1192_v0 }
 0x42c   : > { %1018 = vmatmul.mubr.msk.f32.gmra.mxu1 %vm756_vm9, %v727_v49 }
 0x4e4   : > { %v835_v51 = vpop.f32.mrf.mxu0  ;;  %v841_v52 = vpop.f32.mrf.mxu1 }
 0x4e5   : > { %v836_v31 = vadd.f32 %v835_v51, %v739_v23  ;;  %v842_v53 = vadd.f32 %v841_v52, %v744_v50 }
 0x4e6   : > { %v837_v24 = vpop.f32.mrf.mxu0  ;;  %v843_v34 = vpop.f32.mrf.mxu1 }
 0x4e7   : > { %v1019_v35 = vmul.f32 -1.442695, %v836_v31  ;;  %v1021_v54 = vmul.f32 -1.442695, %v842_v53  ;;  %v838_v56 = vadd.f32 %v837_v24, %v739_v23  ;;  %v844_v57 = vadd.f32 %v843_v34, %v744_v50 }
 0x4e8   : > { %v847_v58 = vpop.f32.mrf.mxu1 }
 0x4e9   : > { %1098 = vpow2.f32 %v1019_v35  ;;  %v1020_v0 = vmul.f32 -1.442695, %v838_v56  ;;  %v1022_v59 = vmul.f32 -1.442695, %v844_v57  ;;  %v848_v60 = vadd.f32 %v847_v58, %v749_v32 }
 0x4ea   : > { %1100 = vpow2.f32 %v1021_v54  ;;  %v849_v37 = vpop.f32.mrf.mxu1 }
 0x4eb   : > { %1102 = vpow2.f32 %v1020_v0  ;;  %v1023_v45 = vmul.f32 -1.442695, %v848_v60  ;;  %v850_v46 = vadd.f32 %v849_v37, %v749_v32 }
 0x4ec   : > { %1104 = vpow2.f32 %v1022_v59  ;;  %v853_v61 = vpop.f32.mrf.mxu1 }
 0x4ed   : > { %1106 = vpow2.f32 %v1023_v45  ;;  %v1024_v62 = vmul.f32 -1.442695, %v850_v46  ;;  %v854_v63 = vadd.f32 %v853_v61, %v754_v55 }
 0x4ee   : > { %v855_v1 = vpop.f32.mrf.mxu1 }
 0x4ef   : > { %1108 = vpow2.f32 %v1024_v62  ;;  %v1025_v2 = vmul.f32 -1.442695, %v854_v63  ;;  %v856_v3 = vadd.f32 %v855_v1, %v754_v55 }
 0x4f1   : > { %1110 = vpow2.f32 %v1025_v2  ;;  %v1026_v4 = vmul.f32 -1.442695, %v856_v3 }
 0x4f3   : > { %1112 = vpow2.f32 %v1026_v4 }
 0x4f6   : > { %v1099_v5 = vpop.eup %1098 }
 0x4f7   : > { %v1101_v6 = vpop.eup %1100  ;;  %v882_v7 = vadd.f32 1.0, %v1099_v5 }
 0x4f8   : > { %v1103_v8 = vpop.eup %1102  ;;  %v884_v9 = vadd.f32 1.0, %v1101_v6 }
 0x4f9   : > { %v1105_v10 = vpop.eup %1104  ;;  %1114 = vrcp.f32 %v882_v7  ;;  %v883_v13 = vadd.f32 1.0, %v1103_v8 }
 0x4fa   : > { %v1107_v14 = vpop.eup %1106  ;;  %1116 = vrcp.f32 %v884_v9  ;;  %v885_v15 = vadd.f32 1.0, %v1105_v10 }
 0x4fb   : > { %1118 = vrcp.f32 %v883_v13  ;;  %v886_v16 = vadd.f32 1.0, %v1107_v14 }
 0x4fc   : > { %v1109_v19 = vpop.eup %1108  ;;  %1120 = vrcp.f32 %v885_v15 }
 0x4fd   : > { %1122 = vrcp.f32 %v886_v16  ;;  %v887_v20 = vadd.f32 1.0, %v1109_v19 }
 0x4fe   : > { %v1111_v21 = vpop.eup %1110 }
 0x4ff   : > { %1124 = vrcp.f32 %v887_v20  ;;  %v888_v11 = vadd.f32 1.0, %v1111_v21 }
 0x500   : > { %v1113_v26 = vpop.eup %1112 }
 0x501   : > { %1126 = vrcp.f32 %v888_v11  ;;  %v889_v12 = vadd.f32 1.0, %v1113_v26 }
 0x503   : > { %1128 = vrcp.f32 %v889_v12 }
 0x506   : > { %v1115_v27 = vpop.eup %1114 }
 0x507   : > { %v1117_v17 = vpop.eup %1116  ;;  %v906_v18 = vmul.f32 %v1115_v27, %v836_v31 }
 0x508   : > { %v1119_v28 = vpop.eup %1118  ;;  %v908_v30 = vmul.f32 %v1117_v17, %v842_v53 }
 0x509   : > { %v1121_v33 = vpop.eup %1120  ;;  %914 = vst [vmem:[%s245_s15] sm:$0xff] %v906_v18  ;;  %v907_v36 = vmul.f32 %v1119_v28, %v838_v56 }
 0x50a   : > { %v1123_v38 = vpop.eup %1122  ;;  %916 = vst [vmem:[%s245_s15 + $0x10] sm:$0xff] %v908_v30  ;;  %v909_v40 = vmul.f32 %v1121_v33, %v844_v57 }
 0x50b   : > { %915 = vst [vmem:[%s245_s15 + $0x8] sm:$0xff] %v907_v36  ;;  %v910_v22 = vmul.f32 %v1123_v38, %v848_v60 }
 0x50c   : > { %v1125_v41 = vpop.eup %1124  ;;  %917 = vst [vmem:[%s245_s15 + $0x18] sm:$0xff] %v909_v40 }
 0x50d   : > { %918 = vst [vmem:[%s245_s15 + $0x20] sm:$0xff] %v910_v22  ;;  %v911_v29 = vmul.f32 %v1125_v41, %v850_v46 }
 0x50e   : > { %v1127_v43 = vpop.eup %1126 }
 0x50f   : > { %919 = vst [vmem:[%s245_s15 + $0x28] sm:$0xff] %v911_v29  ;;  %v912_v44 = vmul.f32 %v1127_v43, %v854_v63 }
 0x510   : > { %v1129_v25 = vpop.eup %1128 }
 0x511   : > { %920 = vst [vmem:[%s245_s15 + $0x30] sm:$0xff] %v912_v44  ;;  %v913_v47 = vmul.f32 %v1129_v25, %v856_v3 }
 0x513   : > { %921 = vst [vmem:[%s245_s15 + $0x38] sm:$0xff] %v913_v47 }
 0x514   : > { %1143 = shalt.err (!%p1140_p3)
}
 0x515   : > { %s1144_s18 = scalar_lea.hbm %s1614_s11, 1024  ;;  %s1148_s26 = scalar_lea.hbm %s1665_s6, 2048 }
 0x516   : > { %p1145_p4 = scmp.ne.s32.totalorder %s1614_s11, %s1144_s18  ;;  %p1149_p9 = scmp.lt.s32.totalorder %s1614_s11, %s1665_s6 }
 0x517   : > { %p1150_p10 = scmp.lt.s32.totalorder %s1148_s26, %s1144_s18 }
 0x518   : > { %p1146_p7 = pnand %p1145_p4, %p1278_p5 }
 0x519   : > { %p1151_p11 = por %p1150_p10, %p1149_p9 }
 0x51a   : > { %p1147_p8 = pneg %p1146_p7 }
 0x51c   : > { %p1152_p12 = pnand %p1151_p11, %p1147_p8 }
 0x51e   : > { %1155 = shalt.err (!%p1152_p12)
}
 0x51f   : > { %s1203_s10 = smov 256   ;;  %s1204_s28 = smov 512  }
 0x520   : > { %1037 = dma.vmem_to_hbm [thread:$0]  (%p1278_p5), %s1609_s9, 1024, %s1614_s11, %s1618_s12, %s1203_s10, %s1204_s28, %s1199_s16  }
 0x521 PF: > { %p1043_p13 = scmp.ge.s32.totalorder %s1190_s24, 2  ;;  %s951_s25 = sand.u32 1, %s1178_s21  }
 0x522   : > { %s952_s13 = scalar_lea.sflag [#allocation4], %s951_s25 }
 0x523   : > { %p1040_p0 = pnand %p1043_p13, %p1282_p6 }
 0x525   : > { %p1041_p1 = pneg %p1040_p0 }
 0x527   : > { %1173 = dma.done.wait (%p1041_p1), %s952_s13, 1024  }
 0x528   : > { %1175 = vsyncadd (%p1041_p1), %s952_s13, 4294966272  ;;  %p16_p2 = scmp.ge.s32.totalorder %s1265_s27, 4   ;;  %s1668_s21 = smov %s1182_s22 }
 0x529   : > { %s1669_s22 = smov %s1186_s23  ;;  %s1670_s23 = smov %s1276_s30 }
 0x52a   : > { %s1671_s24 = smov %s1265_s27  ;;  %18 = sbr.rel (!%p16_p2) target bundleno = 3 (0x3), region = 86 }
 0x52f   :  { %957 = vsyncpa [#allocation4], 1 }
 0x530   :  { %959 = vsyncpa [#allocation4 + $0x1], 1 }

</bundles_post_ra>
